<compile_context>
chip_gen: v7x
topology: tpu7x:2x2x1
jax: 0.10.0
libtpu: 0.0.40
codegen_flags: <defaults>
</compile_context>

<pallas_src>
import functools

import jax
import jax.numpy as jnp
from jax.experimental import pallas as pl
from jax.experimental.pallas import tpu as pltpu


def _conv1d_glu_kernel(x_ref, w_ref, b_ref, o_ref, *, pad):
    # x_ref: (bt, Cin, T)       activations, NCW (time on lanes); also residual
    # w_ref: (2*Cout, K*Cin)    fused im2col conv weight (tap-major columns)
    # b_ref: (2*Cout, 1)        fused conv bias
    # o_ref: (bt, Cout, T)      output, NCW
    bt, cin, T = x_ref.shape
    two_cout = w_ref.shape[0]
    cout = two_cout // 2
    K = w_ref.shape[1] // cin
    mm_dtype = w_ref.dtype

    # Loop-invariant tap masks (depend only on the tap offset) — built once.
    t_idx = jax.lax.broadcasted_iota(jnp.int32, (cin, T), 1)
    tap_masks = []
    for k in range(K):
        d = k - pad
        if d == 0:
            tap_masks.append(None)
        elif d > 0:
            tap_masks.append(t_idx < (T - d))
        else:
            tap_masks.append(t_idx >= (-d))

    bias_f32 = b_ref[...].astype(jnp.float32)                  # (2*Cout, 1)

    # In-register im2col: per batch, stack the K shifted/masked copies of x
    # along sublanes -> (K*Cin, T); lane-concat the batch tile -> (K*Cin, bt*T).
    # "same" padding is realized with an XLU lane rotate + zero mask.
    resid = []
    cols = []
    for i in range(bt):                      # static unroll over the batch tile
        xf = x_ref[i].astype(jnp.float32)    # (Cin, T), single DMA, f32 residual
        resid.append(xf)
        taps = []
        for k in range(K):                   # static unroll over conv taps
            d = k - pad
            if d == 0:
                xk = xf
            else:
                xk = pltpu.roll(xf, shift=(-d) % T, axis=1)    # XLU, cheap slot
                xk = jnp.where(tap_masks[k], xk, 0.0)
            taps.append(xk)
        cols.append(jnp.concatenate(taps, axis=0))             # (K*Cin, T)
    x_stack = cols[0] if bt == 1 else jnp.concatenate(cols, axis=1)
    x_stack = x_stack.astype(mm_dtype)                         # (K*Cin, bt*T)

    # One fused MXU matmul for all K taps and both GLU halves, f32 accumulation:
    # (2*Cout, K*Cin) x (K*Cin, bt*T) -> (2*Cout, bt*T).
    y = jnp.dot(w_ref[...], x_stack, preferred_element_type=jnp.float32)
    y = y + bias_f32

    # GLU split at row Cout (static sublane slice on a multiple of 8 -> free).
    glu = y[:cout] * jax.nn.sigmoid(y[cout:])

    for i in range(bt):                      # static lane slices per batch
        o_ref[i] = (resid[i] + glu[:, i * T:(i + 1) * T]).astype(o_ref.dtype)


@functools.partial(jax.jit,
                   static_argnames=("kernel_size", "batch_tile", "use_bf16"))
def conv1d_glu(x, weight, bias, *, kernel_size, batch_tile=1, use_bf16=False):
    """Conv1dGLU forward (eval mode).

    Args:
      x     : (B, C, T)          float32, PyTorch NCW layout.
      weight: (2*Cout, Cin, K)   Conv1d weight (PyTorch layout).
      bias  : (2*Cout,)          Conv1d bias.
      kernel_size: K (odd).
      batch_tile : batches processed per grid step (must divide B).
                   On v7x keep B // batch_tile >= 2 (two TensorCores); on
                   v5e/v6e a larger tile amortizes the ~0.35us/step overhead
                   and widens the MXU N dimension to batch_tile*T.
      use_bf16   : cast weights + matmul operand to bf16 for the MXU
                   (valid on v5e/v6e/v7x); accumulation and residual stay f32.
    Returns:
      (B, C, T) in x.dtype (requires Cin == Cout for the residual add).
    """
    B, Cin, T = x.shape
    two_cout, wcin, K = weight.shape
    cout = two_cout // 2
    assert K == kernel_size and K % 2 == 1
    assert wcin == Cin
    assert Cin == cout, "residual connection requires in_channels == out_channels"
    assert B % batch_tile == 0
    pad = (K - 1) // 2
    bt = batch_tile

    # Fused im2col weight: W_f[o, k*Cin + c] = weight[o, c, k] -> (2*Cout, K*Cin).
    w_fused = jnp.transpose(weight, (0, 2, 1)).reshape(two_cout, K * Cin)
    b_fused = bias.reshape(two_cout, 1).astype(jnp.float32)
    if use_bf16:
        w_fused = w_fused.astype(jnp.bfloat16)
    # x stays f32 in HBM; only the matmul operand is cast in-kernel, so the
    # residual add remains exact.

    kernel = functools.partial(_conv1d_glu_kernel, pad=pad)

    return pl.pallas_call(
        kernel,
        out_shape=jax.ShapeDtypeStruct((B, cout, T), x.dtype),
        grid_spec=pltpu.PrefetchScalarGridSpec(
            num_scalar_prefetch=0,
            grid=(B // bt,),
            in_specs=[
                pl.BlockSpec((bt, Cin, T), lambda b: (b, 0, 0)),
                pl.BlockSpec((two_cout, K * Cin), lambda b: (0, 0)),
                pl.BlockSpec((two_cout, 1), lambda b: (0, 0)),
            ],
            out_specs=pl.BlockSpec((bt, cout, T), lambda b: (b, 0, 0)),
        ),
        compiler_params=pltpu.CompilerParams(
            dimension_semantics=("parallel",)),
    )(x, w_fused, b_fused)


def _reference(x_ncw, weight, bias):
    """Pure-JAX reference (mirrors torch.nn.Conv1d + GLU + residual)."""
    two_cout = weight.shape[0]
    cout = two_cout // 2
    K = weight.shape[2]
    pad = (K - 1) // 2
    y = jax.lax.conv_general_dilated(
        x_ncw, weight,
        window_strides=(1,),
        padding=[(pad, pad)],
        dimension_numbers=("NCH", "OIH", "NCH"),
    ) + bias[None, :, None]
    x1, x2 = y[:, :cout, :], y[:, cout:, :]
    return x_ncw + x1 * jax.nn.sigmoid(x2)


if __name__ == "__main__":
    # Module config: Conv1dGLU(in_channels=16, out_channels=16, kernel_size=3, dropout=0.1)
    in_channels = 16
    out_channels = 16
    kernel_size = 3
    B, T = 2, 128   # T multiple of 128 -> lane-dense (unmasked) output stores

    key = jax.random.PRNGKey(0)
    kx, kw, kb = jax.random.split(key, 3)

    x = jax.random.normal(kx, (B, in_channels, T), dtype=jnp.float32)
    weight = 0.1 * jax.random.normal(
        kw, (2 * out_channels, in_channels, kernel_size), dtype=jnp.float32)
    bias = 0.1 * jax.random.normal(kb, (2 * out_channels,), dtype=jnp.float32)

    ref = _reference(x, weight, bias)

    # f32, one batch per grid step ('parallel' axis of extent 2 -> both v7x TCs).
    out = jax.block_until_ready(
        conv1d_glu(x, weight, bias, kernel_size=kernel_size, batch_tile=1))
    assert out.shape == (B, in_channels, T)
    assert jnp.allclose(out, ref, atol=2e-5, rtol=2e-5), "f32 bt=1 mismatch"

    # Whole batch collapsed into one grid step: lane-stacked RHS (N = 2*T = 256),
    # amortizes per-step overhead (preferred on v5e/v6e).
    out2 = jax.block_until_ready(
        conv1d_glu(x, weight, bias, kernel_size=kernel_size, batch_tile=2))
    assert jnp.allclose(out2, ref, atol=2e-5, rtol=2e-5), "f32 bt=2 mismatch"

    # bf16 matmul operands on the MXU, f32 accumulation and exact f32 residual.
    out3 = jax.block_until_ready(
        conv1d_glu(x, weight, bias, kernel_size=kernel_size,
                   batch_tile=2, use_bf16=True))
    assert jnp.allclose(out3, ref, atol=2e-2, rtol=2e-2), "bf16 mismatch"

    # Non-128-multiple T still correct (stores become masked but valid).
    x_s = jax.random.normal(kx, (B, in_channels, 40), dtype=jnp.float32)
    ref_s = _reference(x_s, weight, bias)
    out_s = jax.block_until_ready(
        conv1d_glu(x_s, weight, bias, kernel_size=kernel_size, batch_tile=1))
    assert jnp.allclose(out_s, ref_s, atol=2e-5, rtol=2e-5), "odd-T bt=1 mismatch"
    out_s2 = jax.block_until_ready(
        conv1d_glu(x_s, weight, bias, kernel_size=kernel_size, batch_tile=2))
    assert jnp.allclose(out_s2, ref_s, atol=2e-5, rtol=2e-5), "odd-T bt=2 mismatch"

    print("KERNEL_OK")
</pallas_src>

<mosaic_0001>
module attributes {stable_mosaic.version = 11 : i64} {
  func.func @_conv1d_glu_kernel(%arg0: i32, %arg1: memref<1x16x128xf32, #tpu.memory_space<vmem>>, %arg2: memref<32x48xf32, #tpu.memory_space<vmem>>, %arg3: memref<32x1xf32, #tpu.memory_space<vmem>>, %arg4: memref<1x16x128xf32, #tpu.memory_space<vmem>>) attributes {dimension_semantics = [#tpu.dimension_semantics<parallel>], iteration_bounds = array<i64: 2>, scalar_prefetch = 0 : i64, scratch_operands = 0 : i64, tpu.core_type = #tpu.core_type<tc>, window_params = [{transform_indices = @transform_0, window_bounds = array<i64: 1, 16, 128>}, {pipeline_mode = #tpu.pipeline_mode<synchronous>, transform_indices = @transform_1, window_bounds = array<i64: 32, 48>}, {pipeline_mode = #tpu.pipeline_mode<synchronous>, transform_indices = @transform_2, window_bounds = array<i64: 32, 1>}, {transform_indices = @transform_3, window_bounds = array<i64: 1, 16, 128>}]} {
    %0 = tpu.iota {dimensions = array<i32: 1>} : vector<16x128xi32>
    %c1_i32 = arith.constant 1 : i32
    %1 = vector.broadcast %c1_i32 : i32 to vector<16x128xi32>
    %2 = arith.cmpi sge, %0, %1 : vector<16x128xi32>
    %c127_i32 = arith.constant 127 : i32
    %3 = vector.broadcast %c127_i32 : i32 to vector<16x128xi32>
    %4 = arith.cmpi slt, %0, %3 : vector<16x128xi32>
    %c0 = arith.constant 0 : index
    %c0_0 = arith.constant 0 : index
    %5 = vector.load %arg3[%c0, %c0_0] : memref<32x1xf32, #tpu.memory_space<vmem>>, vector<32x1xf32>
    %c0_1 = arith.constant 0 : index
    %c0_2 = arith.constant 0 : index
    %c0_3 = arith.constant 0 : index
    %6 = vector.load %arg1[%c0_1, %c0_2, %c0_3] : memref<1x16x128xf32, #tpu.memory_space<vmem>>, vector<1x16x128xf32>
    %7 = vector.shape_cast %6 : vector<1x16x128xf32> to vector<16x128xf32>
    %c1_i32_4 = arith.constant 1 : i32
    %8 = tpu.dynamic_rotate %7 by %c1_i32_4 dim 1 : vector<16x128xf32>, i32 -> vector<16x128xf32>
    %cst = arith.constant 0.000000e+00 : f32
    %9 = vector.broadcast %cst : f32 to vector<16x128xf32>
    %10 = arith.select %2, %8, %9 : vector<16x128xi1>, vector<16x128xf32>
    %c127_i32_5 = arith.constant 127 : i32
    %11 = tpu.dynamic_rotate %7 by %c127_i32_5 dim 1 : vector<16x128xf32>, i32 -> vector<16x128xf32>
    %cst_6 = arith.constant 0.000000e+00 : f32
    %12 = vector.broadcast %cst_6 : f32 to vector<16x128xf32>
    %13 = arith.select %4, %11, %12 : vector<16x128xi1>, vector<16x128xf32>
    %14 = tpu.concatenate %10, %7, %13 in 0 : vector<16x128xf32>, vector<16x128xf32>, vector<16x128xf32> -> vector<48x128xf32>
    %c0_7 = arith.constant 0 : index
    %c0_8 = arith.constant 0 : index
    %15 = vector.load %arg2[%c0_7, %c0_8] : memref<32x48xf32, #tpu.memory_space<vmem>>, vector<32x48xf32>
    %cst_9 = arith.constant dense<0.000000e+00> : vector<32x128xf32>
    %16 = tpu.matmul %15, %14, %cst_9 {dimension_numbers = #tpu.dot_dimension_numbers<[1], [0], [0], [1], [0, 0, 1, 1], [], []>} : vector<32x48xf32>, vector<48x128xf32>, vector<32x128xf32> -> vector<32x128xf32>
    %17 = vector.broadcast %5 : vector<32x1xf32> to vector<32x128xf32>
    %18 = arith.addf %16, %17 : vector<32x128xf32>
    %19 = vector.extract_strided_slice %18 {offsets = [0, 0], sizes = [16, 128], strides = [1, 1]} : vector<32x128xf32> to vector<16x128xf32>
    %20 = vector.extract_strided_slice %18 {offsets = [16, 0], sizes = [16, 128], strides = [1, 1]} : vector<32x128xf32> to vector<16x128xf32>
    %21 = arith.negf %20 : vector<16x128xf32>
    %22 = math.exp %21 : vector<16x128xf32>
    %cst_10 = arith.constant 1.000000e+00 : f32
    %23 = vector.broadcast %cst_10 : f32 to vector<16x128xf32>
    %24 = arith.addf %23, %22 : vector<16x128xf32>
    %25 = arith.divf %23, %24 : vector<16x128xf32>
    %26 = arith.mulf %19, %25 : vector<16x128xf32>
    %27 = arith.addf %7, %26 : vector<16x128xf32>
    %c0_11 = arith.constant 0 : index
    %c0_12 = arith.constant 0 : index
    %c0_13 = arith.constant 0 : index
    %28 = vector.load %arg4[%c0_11, %c0_12, %c0_13] : memref<1x16x128xf32, #tpu.memory_space<vmem>>, vector<1x16x128xf32>
    %29 = vector.shape_cast %28 : vector<1x16x128xf32> to vector<16x128xf32>
    %30 = vector.shape_cast %27 : vector<16x128xf32> to vector<1x16x128xf32>
    tpu.vector_store %arg4[%c0_11, %c0_12, %c0_13], %30 {strides = array<i32>} : memref<1x16x128xf32, #tpu.memory_space<vmem>>, vector<1x16x128xf32>,
    return
  }
  func.func @transform_0(%arg0: i32) -> (i32, i32, i32) {
    %c0_i32 = arith.constant 0 : i32
    %c0_i32_0 = arith.constant 0 : i32
    %c0_i32_1 = arith.constant 0 : i32
    return %arg0, %c0_i32, %c0_i32_0 : i32, i32, i32
  }
  func.func @transform_1(%arg0: i32) -> (i32, i32) {
    %c0_i32 = arith.constant 0 : i32
    %c0_i32_0 = arith.constant 0 : i32
    %c0_i32_1 = arith.constant 0 : i32
    return %c0_i32, %c0_i32_0 : i32, i32
  }
  func.func @transform_2(%arg0: i32) -> (i32, i32) {
    %c0_i32 = arith.constant 0 : i32
    %c0_i32_0 = arith.constant 0 : i32
    %c0_i32_1 = arith.constant 0 : i32
    return %c0_i32, %c0_i32_0 : i32, i32
  }
  func.func @transform_3(%arg0: i32) -> (i32, i32, i32) {
    %c0_i32 = arith.constant 0 : i32
    %c0_i32_0 = arith.constant 0 : i32
    %c0_i32_1 = arith.constant 0 : i32
    return %arg0, %c0_i32, %c0_i32_0 : i32, i32, i32
  }
}

</mosaic_0001>

<bundles_post_ra>
// kernel: conv1d_glu.1
= control target key start
LH: loop header
LB: loop body
LE: loop exit
PB: predicated region body
PF: predicated region fallthrough
CT: control target
= control target key end

     0   :  { %8 = vsyncpa [#allocation3], 0  ;;  %s776_s0 = inlined_call_operand.vmem [shape: f32[2,16,128], index: 0, kind: input, shape index: {}]   ;;  %s777_s1 = inlined_call_operand.vmem [shape: f32[32,48], index: 1, kind: input, shape index: {}]   ;;  %s778_s2 = inlined_call_operand.vmem [shape: f32[32,1], index: 2, kind: input, shape index: {}]   ;;  %s779_s3 = inlined_call_operand.hbm [shape: f32[2,16,128], index: 3, kind: output, shape index: {}]  }
   0x1   :  { %10 = vsyncpa [#allocation3 + $0x1], 0  ;;  %s635_s12 = smov 0   ;;  %s637_s13 = smov 0  }
   0x2   :  { %s639_s14 = smov 0   ;;  %s641_s15 = smov 0  }
   0x3 LB: > { %s656_s16 = sadd.s32 4294967295, %s607_s15   ;;  %s407_s17 = sadd.s32 4294967294, %s607_s15   ;;  %s607_s15 = sphi %s641_s15, %s785_s15   ;;  %s603_s14 = sphi %s639_s14, %s784_s14   ;;  %s599_s13 = sphi %s637_s13, %s783_s13   ;;  %s595_s12 = sphi %s635_s12, %s782_s12  }
   0x4   : > { %s660_s18 = sadd.s32 1, %s607_s15   ;;  %s91_s19 = sadd.s32 1, %s603_s14 }
   0x5   : > { %s88_s20 = ssub.s32 %s607_s15, %s660_s18  ;;  %p101_p0 = scmp.ne.s32.totalorder %s603_s14, %s599_s13 }
   0x6   : > { %p89_p1 = scmp.eq.s32.totalorder %s88_s20, 0  ;;  %p102_p2 = scmp.eq.s32.totalorder %s656_s16, 1 }
   0x7   : > { %p107_p3 = scmp.ne.s32.totalorder %s599_s13, %s595_s12  ;;  %p108_p4 = scmp.eq.s32.totalorder %s407_s17, 1 }
   0x8   : > { %s671_s21 = scalar_select %p89_p1, %s603_s14, %s91_s19  }
   0x9   : > { %p673_p5 = por %p102_p2, %p101_p0  ;;  %p677_p6 = por %p108_p4, %p107_p3 }
   0xa   : > { %p410_p7 = scmp.ge.s32.totalorder %s607_s15, 1  ;;  %p140_p8 = scmp.lt.s32.totalorder %s607_s15, 3 }
   0xc   : > { %p141_p9 = pnand %p410_p7, %p140_p8 }
   0xd   : > { %p164_p10 = scmp.lt.s32.totalorder (!%p141_p9), %s656_s16, 1  ;;  %s609_s29 = smov (!%p141_p9), 1   ;;  %v191_v3 = vld [vmem:[%s777_s1] sm:$0xff] (!%p141_p9)  ;;  %vm215_vm0 = vcmask (!%p141_p9), 392192   ;;  %v193_v4 = vld [vmem:[%s777_s1 + $0x10] sm:$0xff] (!%p141_p9)  ;;  %v611_v6 = vmov (!%p141_p9), 0   ;;  %v169_v10 = vlaneseq (!%p141_p9) }
   0xe   : > { %144 = sbr.rel (%p141_p9) target bundleno = 419 (0x1a3), region = 32  ;;  %453 = vmatprep.mubr.msk.f32.mxu0 (!%p141_p9), %vm215_vm0, %v191_v3  ;;  %456 = vmatprep.mubr.msk.f32.mxu1 (!%p141_p9), %vm215_vm0, %v193_v4  ;;  %v175_v5 = vld [vmem:[%s778_s2 + $0x10] sm:$0xff] (!%p141_p9)  ;;  %s610_s9 = smov (!%p141_p9), 127   ;;  %v173_v7 = vld [vmem:[%s778_s2] sm:$0xff] (!%p141_p9)  ;;  %v176_v8 = vld [vmem:[%s778_s2 + $0x18] sm:$0xff] (!%p141_p9) }
   0xf   : > { %535 = vset.pattern.permute.xlu1 (!%p141_p9), %v611_v6  ;;  %536 = vset.pattern.permute.xlu0 (!%p141_p9), %v611_v6  ;;  %v174_v9 = vld [vmem:[%s778_s2 + $0x8] sm:$0xff] (!%p141_p9)  ;;  %v170_v11 = vand.u32 (!%p141_p9), 127, %v169_v10  ;;  %v194_v22 = vld [vmem:[%s777_s1 + $0x18] sm:$0xff] (!%p141_p9)  ;;  %s430_s6 = sshll.u32 (!%p141_p9), %s656_s16, 8  ;;  %s612_s11 = smov (!%p141_p9), [#allocation2]  }
  0x10   : > { %207 = vperm.xlu1 (!%p141_p9), %535, %v175_v5   ;;  %v192_v21 = vld [vmem:[%s777_s1 + $0x8] sm:$0xff] (!%p141_p9)  ;;  %s549_s17 = sshll.u32 (!%p141_p9), %s612_s11, 4  ;;  %s550_s17 = int_to_ptr.vmem [resolvable:$false] %s549_s17 }
  0x11   : > { %vm171_vm1 = vcmp.ge.s32.totalorder (!%p141_p9), %v170_v11, 1  ;;  %vm172_vm3 = vcmp.lt.s32.totalorder (!%p141_p9), %v170_v11, 127  ;;  %s551_s19 = scalar_lea.vmem (!%p141_p9), %s550_s17, 512 }
  0x12   : > { %vm460_vm2 = vmpackc.low (!%p141_p9), %vm171_vm1, %vm171_vm1 }
  0x13   : > { %vm470_vm4 = vmpackc.low (!%p141_p9), %vm172_vm3, %vm172_vm3 }
  0x14   : > { %212 = vperm.xlu1 (!%p141_p9), %535, %v176_v8  }
  0x15   : > { %s165_s24 = scalar_select %p164_p10, %s656_s16, 1 }
  0x17   : > { %s429_s25 = sshll.u32 %s165_s24, 4 }
  0x18   : > { %s168_s28 = scalar_lea.vmem %s776_s0, %s429_s25  ;;  %202 = vperm.xlu1 %535, %v174_v9  }
  0x19   : > { %v688_v0 = vld [vmem:[%s168_s28] sm:$0xff]  ;;  %v690_v1 = vld [vmem:[%s168_s28 + $0x8] sm:$0xff] }
  0x1a   : > { %v525_v2 = vpack.i.bf16 %v690_v1, %v688_v0  ;;  %v465_v16 = vpack.c.bf16 %v690_v1, %v688_v0 }
  0x1c   : > { %526 = vrot.lane.b32.xlu0 %v525_v2, %s609_s29  ;;  %s161_s29 = sand.u32 1, %s599_s13  }
  0x1d   : > { %s411_s30 = sshll.u32 %s161_s29, 4  ;;  %s735_s16 = scalar_lea.sflag [#allocation3], %s161_s29 }
  0x1e   : > { %s163_s4 = scalar_lea.vmem [#allocation2], %s411_s30 }
  0x1f   : > { %s345_s5 = sshll.u32 %s163_s4, 4  ;;  %s727_s5 = int_to_ptr.vmem [resolvable:$true] %s345_s5 }
  0x20   : > { %531 = vrot.lane.b32.xlu0 %v525_v2, %s610_s9  ;;  %s732_s9 = scalar_lea.hbm %s779_s3, %s430_s6  ;;  %s545_s10 = scalar_lea.vmem %s727_s5, 256 }
  0x21   : > { %p546_p11 = scmp.ne.s32.totalorder %s727_s5, %s545_s10  ;;  %p552_p0 = scmp.lt.s32.totalorder %s727_s5, %s550_s17 }
  0x22   : > { %p553_p1 = scmp.lt.s32.totalorder %s551_s19, %s545_s10 }
  0x23   : > { %p547_p12 = pnand %p546_p11, %p673_p5 }
  0x24   : > { %197 = vperm.xlu0 %536, %v173_v7   ;;  %p554_p2 = por %p553_p1, %p552_p0 }
  0x25   : > { %p548_p13 = pneg %p547_p12 }
  0x27   : > { %p555_p3 = pnand %p554_p2, %p548_p13 }
  0x8e   : > { %v527_v12 = vpop.permute.xlu0 %526 }
  0x8f   : > { %v529_v13 = vunpack.i.h.bf16 %v527_v12  ;;  %v528_v14 = vunpack.i.l.bf16 %v527_v12  ;;  %v208_v23 = vpop.permute.xlu1 %207 }
  0x91   : > { %v459_v15 = vpack.c.bf16 %v529_v13, %v528_v14 }
  0x92   : > { %v532_v17 = vpop.permute.xlu0 %531 }
  0x93   : > { %461 = vmatprep.subr.msk.bf16.mxu0 %vm460_vm2, %v459_v15  ;;  %475 = vmatprep.subr.msk.bf16.mxu1 %vm460_vm2, %v459_v15  ;;  %v534_v18 = vunpack.i.h.bf16 %v532_v17  ;;  %v533_v19 = vunpack.i.l.bf16 %v532_v17  ;;  %v213_v24 = vpop.permute.xlu1 %212 }
  0x94   : > { %464 = vmatpush3.bf16.msk.msra.mxu0 %vm460_vm2, %v459_v15  ;;  %478 = vmatpush3.bf16.msk.msra.mxu1 %vm460_vm2, %v459_v15 }
  0x95   : > { %v469_v20 = vpack.c.bf16 %v534_v18, %v533_v19  ;;  %466 = vmatprep.subr.bf16.mxu0 %v465_v16  ;;  %476 = vmatprep.subr.bf16.mxu1 %v465_v16 }
  0x97   : > { %v203_v38 = vpop.permute.xlu1 %202 }
  0x98   : > { %468 = vmatpush3.bf16.msra.mxu0 %v465_v16  ;;  %479 = vmatpush3.bf16.msra.mxu1 %v465_v16 }
  0x99   : > { %471 = vmatprep.subr.msk.bf16.mxu0 %vm470_vm4, %v469_v20  ;;  %477 = vmatprep.subr.msk.bf16.mxu1 %vm470_vm4, %v469_v20 }
  0x9c   : > { %474 = vmatpush3.bf16.msk.msra.mxu0 %vm470_vm4, %v469_v20  ;;  %480 = vmatpush3.bf16.msk.msra.mxu1 %vm470_vm4, %v469_v20 }
  0x9f   : > { %454 = vmatmul.mubr.msk.f32.vlgmr.msra.gmra.mrb[0].mxu0 %vm215_vm0, %v192_v21  ;;  %457 = vmatmul.mubr.msk.f32.vlgmr.msra.gmra.mrb[0].mxu1 %vm215_vm0, %v194_v22 }
  0xa3   : > { %v198_v37 = vpop.permute.xlu0 %197 }
 0x172   : > { %v455_v25 = vpop.f32.mrb[0].mxu0  ;;  %v458_v26 = vpop.f32.mrb[0].mxu1 }
 0x173   : > { %v310_v27 = vadd.f32 %v458_v26, %v213_v24  ;;  %v304_v28 = vpop.f32.mrb[1].mxu1  ;;  %v294_v29 = vpop.f32.mrb[1].mxu0  ;;  %v300_v40 = vadd.f32 %v455_v25, %v203_v38 }
 0x174   : > { %v305_v30 = vadd.f32 %v304_v28, %v208_v23  ;;  %v295_v39 = vadd.f32 %v294_v29, %v198_v37 }
 0x175   : > { %v423_v31 = vmul.f32 -1.442695, %v310_v27 }
 0x176   : > { %v422_v32 = vmul.f32 -1.442695, %v305_v30 }
 0x177   : > { %537 = vpow2.f32 %v423_v31 }
 0x178   : > { %539 = vpow2.f32 %v422_v32 }
 0x181   : > { %v538_v33 = vpop.eup %537 }
 0x182   : > { %v540_v34 = vpop.eup %539  ;;  %v320_v35 = vadd.f32 1.0, %v538_v33 }
 0x183   : > { %v319_v36 = vadd.f32 1.0, %v540_v34 }
 0x184   : > { %541 = vrcp.f32 %v320_v35 }
 0x185   : > { %543 = vrcp.f32 %v319_v36 }
 0x18e   : > { %v542_v41 = vpop.eup %541 }
 0x18f   : > { %v544_v42 = vpop.eup %543  ;;  %v326_v43 = vmul.f32 %v542_v41, %v300_v40 }
 0x190   : > { %v325_v44 = vmul.f32 %v544_v42, %v295_v39 }
 0x191   : > { %v328_v45 = vadd.f32 %v326_v43, %v690_v1 }
 0x192   : > { %v327_v46 = vadd.f32 %v325_v44, %v688_v0 }
 0x193   : > { %330 = vst [vmem:[%s163_s4 + $0x8] sm:$0xff] %v328_v45 }
 0x194   : > { %329 = vst [vmem:[%s163_s4] sm:$0xff] %v327_v46 }
 0x195   : > { %558 = shalt.err (!%p555_p3)
}
 0x196   : > { %s559_s20 = scalar_lea.hbm %s732_s9, 256  ;;  %s563_s26 = scalar_lea.hbm %s779_s3, 512 }
 0x197   : > { %p560_p4 = scmp.ne.s32.totalorder %s732_s9, %s559_s20  ;;  %p564_p9 = scmp.lt.u32.totalorder %s732_s9, %s779_s3 }
 0x198   : > { %p565_p10 = scmp.lt.u32.totalorder %s563_s26, %s559_s20  ;;  %p567_p12 = scmp.lt.u32.totalorder %s559_s20, %s732_s9 }
 0x199   : > { %p561_p7 = pnand %p560_p4, %p673_p5 }
 0x19a   : > { %p566_p11 = por %p565_p10, %p564_p9 }
 0x19b   : > { %p562_p8 = pneg %p561_p7 }
 0x19c   : > { %p568_p13 = por %p567_p12, %p566_p11 }
 0x19e   : > { %p569_p0 = pnand %p568_p13, %p562_p8 }
 0x1a0   : > { %572 = shalt.err (!%p569_p0)
}
 0x1a1   : > { %s613_s29 = smov 128   ;;  %s614_s30 = smov 8  }
 0x1a2   : > { %481 = dma.vmem_to_hbm [thread:$0]  (%p673_p5), %s727_s5, 256, %s732_s9, %s735_s16, %s613_s29, %s613_s29, %s614_s30  }
 0x1a3 PF: > { %p487_p1 = scmp.ge.s32.totalorder %s607_s15, 2  ;;  %s360_s4 = sand.u32 1, %s595_s12  }
 0x1a4   : > { %s361_s6 = scalar_lea.sflag [#allocation3], %s360_s4 }
 0x1a5   : > { %p484_p2 = pnand %p487_p1, %p677_p6 }
 0x1a7   : > { %590 = dma.done.wait (!%p484_p2), %s361_s6, 256  }
 0x1a8   : > { %592 = vsyncadd (!%p484_p2), %s361_s6, 4294967040  ;;  %p13_p3 = scmp.ge.s32.totalorder %s660_s18, 4   ;;  %s782_s12 = smov %s599_s13 }
 0x1a9   : > { %s783_s13 = smov %s603_s14  ;;  %s784_s14 = smov %s671_s21 }
 0x1aa   : > { %s785_s15 = smov %s660_s18  ;;  %15 = sbr.rel (!%p13_p3) target bundleno = 3 (0x3), region = 67 }
 0x1b1   :  { %366 = vsyncpa [#allocation3], 1 }
 0x1b2   :  { %368 = vsyncpa [#allocation3 + $0x1], 1 }

</bundles_post_ra>
